<compile_context>
chip_gen: v6e
topology: v6e:2x2x1
jax: 0.10.0
libtpu: 0.0.40
codegen_flags: <defaults>
</compile_context>

<pallas_src>
import jax
import jax.numpy as jnp
import numpy as np
from jax import lax
from jax.experimental import pallas as pl
from jax.experimental.pallas import tpu as pltpu

IN_FEATURES = 10   # real input feature width
F_PAD = 16         # padded feature width (all hidden layers are <= 15 wide)
OUT_PAD = 8        # padded class dim of the output slab (3 real classes)
NUM_CLASSES = 3
N_LAYERS = 5
LANE = 128


def _classifier_kernel(x_ref, w_ref, b_ref, o_ref):
    # x_ref: [TB, 10]          batch on sublanes, real feature dim on lanes
    # w_ref: [5, F_PAD, F_PAD] packed weights, layer l is [out, in] (zero-padded)
    # b_ref: [5, F_PAD, 1]     packed biases
    # o_ref: [OUT_PAD, TB]     rows 0..2 hold log_softmax, rest is padding
    x = x_ref[...]                                             # [TB, 10]

    def sigmoid1(z):
        # single-EUP-op sigmoid: sigmoid(z) == 0.5 * tanh(0.5 * z) + 0.5
        return 0.5 * jnp.tanh(0.5 * z) + 0.5

    # Layer 1: W1[16, :10] contracted with x[TB, 10] on the feature axis.
    # The MXU consumes x's transpose directly -> no wrapper-side transpose.
    w1 = w_ref[0][:, :IN_FEATURES]                             # [16, 10]
    z = lax.dot_general(w1, x, (((1,), (1,)), ((), ())),
                        preferred_element_type=jnp.float32)    # [16, TB]
    h = sigmoid1(z + b_ref[0])

    # Layers 2..4 (hidden, sigmoid) — activations stay [F_PAD, TB].
    for l in range(1, 4):
        z = jnp.dot(w_ref[l], h,
                    preferred_element_type=jnp.float32) + b_ref[l]
        h = sigmoid1(z)

    # fc_out (no activation)
    z = jnp.dot(w_ref[4], h, preferred_element_type=jnp.float32) + b_ref[4]

    logits = z[:OUT_PAD, :]                                    # [8, TB]
    # log_softmax over the (sublane) class axis, masking padded class rows.
    row = lax.broadcasted_iota(jnp.int32, logits.shape, 0)
    zm = jnp.where(row < NUM_CLASSES, logits, jnp.float32(-1e30))
    m = jnp.max(zm, axis=0, keepdims=True)                     # [1, TB]
    s = jnp.sum(jnp.exp(zm - m), axis=0, keepdims=True)        # [1, TB]
    lse = m + jnp.log(s)
    o_ref[...] = (logits - lse).astype(o_ref.dtype)


def _round_up(n, m):
    return ((n + m - 1) // m) * m


def _resident_block_spec(block_shape):
    """Full-array block whose index never changes; single-buffer it if possible."""
    index_map = lambda i: (0,) * len(block_shape)
    try:
        return pl.BlockSpec(block_shape, index_map, pipeline_mode=pl.Buffered(1))
    except (AttributeError, TypeError):
        # Older jax without pipeline_mode / Buffered: fall back to default.
        return pl.BlockSpec(block_shape, index_map)


def pack_params(params):
    """Pack nn.Linear-style (W[out,in], b[out]) params once, host-side (numpy)."""
    w_slab = np.zeros((N_LAYERS, F_PAD, F_PAD), np.float32)
    b_slab = np.zeros((N_LAYERS, F_PAD, 1), np.float32)
    for l, (w, b) in enumerate(params):
        w_np = np.asarray(w, np.float32)
        b_np = np.asarray(b, np.float32)
        out_f, in_f = w_np.shape
        w_slab[l, :out_f, :in_f] = w_np
        b_slab[l, :out_f, 0] = b_np
    return jnp.asarray(w_slab), jnp.asarray(b_slab)


def classifier_forward(x, w_slab, b_slab, tb=8192):
    """x: [B, 10] float; w_slab/b_slab from pack_params. Returns [B, 3] log-probs."""
    B, f_in = x.shape
    assert f_in == IN_FEATURES, f_in

    tb = max(LANE, _round_up(tb, LANE))
    b_lane = _round_up(max(B, 1), LANE)
    if b_lane > LANE:
        # Cap the tile at ~half the batch so there are >= 2 grid steps and
        # both v7x TensorCores get work (no effect on v5e/v6e correctness).
        half = _round_up((b_lane + 1) // 2, LANE)
        tile = max(LANE, min(tb, half))
    else:
        tile = LANE
    b_pad = _round_up(B, tile)
    grid = (b_pad // tile,)

    xf = x.astype(jnp.float32)
    if b_pad != B:
        # Cheap contiguous batch pad; no-op when B is already tile-aligned.
        xf = jnp.pad(xf, ((0, b_pad - B), (0, 0)))

    cost = pl.CostEstimate(
        flops=2 * N_LAYERS * F_PAD * F_PAD * b_pad,
        transcendentals=(4 * F_PAD + OUT_PAD + 1) * b_pad,
        bytes_accessed=(IN_FEATURES + OUT_PAD) * 4 * b_pad
        + N_LAYERS * (F_PAD * F_PAD + F_PAD) * 4,
    )

    out_padded = pl.pallas_call(
        _classifier_kernel,
        out_shape=jax.ShapeDtypeStruct((OUT_PAD, b_pad), jnp.float32),
        grid=grid,
        in_specs=[
            # streamed x: (tile, 10); last dim equals full array dim -> OK
            pl.BlockSpec((tile, IN_FEATURES), lambda i: (i, 0)),
            # resident packed weights / biases (constant block index)
            _resident_block_spec((N_LAYERS, F_PAD, F_PAD)),
            _resident_block_spec((N_LAYERS, F_PAD, 1)),
        ],
        out_specs=pl.BlockSpec((OUT_PAD, tile), lambda i: (0, i)),
        compiler_params=pltpu.CompilerParams(
            dimension_semantics=("parallel",)),
        cost_estimate=cost,
    )(xf, w_slab, b_slab)

    return out_padded[:NUM_CLASSES, :B].T                       # [B, 3]


def _init_params(key):
    """Deterministic init mimicking nn.Linear default (uniform +/- 1/sqrt(in))."""
    dims = [(10, 15), (15, 15), (15, 15), (15, 10), (10, 3)]
    params = []
    for (fan_in, fan_out) in dims:
        key, kw, kb = jax.random.split(key, 3)
        bound = 1.0 / np.sqrt(fan_in)
        w = jax.random.uniform(kw, (fan_out, fan_in), jnp.float32, -bound, bound)
        b = jax.random.uniform(kb, (fan_out,), jnp.float32, -bound, bound)
        params.append((w, b))
    return params


def _reference(x, params):
    h = x.astype(jnp.float32)
    for i, (w, b) in enumerate(params):
        h = h @ w.T + b
        if i < len(params) - 1:
            h = jax.nn.sigmoid(h)
    return jax.nn.log_softmax(h, axis=1)


if __name__ == "__main__":
    key = jax.random.PRNGKey(0)
    key, kx1, kx2 = jax.random.split(key, 3)
    params = _init_params(key)
    w_slab, b_slab = pack_params(params)   # packed once, reused across calls

    # Small batch (single tile) and a ragged multi-tile batch (tests batch
    # padding plus the 2-step grid that feeds both TensorCores on v7x).
    x_small = jax.random.normal(kx1, (8, 10), jnp.float32)
    x_big = jax.random.normal(kx2, (300, 10), jnp.float32)

    out_small = jax.block_until_ready(classifier_forward(x_small, w_slab, b_slab))
    out_big = jax.block_until_ready(classifier_forward(x_big, w_slab, b_slab))

    np.testing.assert_allclose(np.asarray(out_small),
                               np.asarray(_reference(x_small, params)),
                               rtol=1e-5, atol=1e-5)
    np.testing.assert_allclose(np.asarray(out_big),
                               np.asarray(_reference(x_big, params)),
                               rtol=1e-5, atol=1e-5)

    print("KERNEL_OK")
</pallas_src>

<mosaic_0001>
module attributes {stable_mosaic.version = 11 : i64} {
  func.func @_classifier_kernel(%arg0: i32, %arg1: memref<128x10xf32, #tpu.memory_space<vmem>>, %arg2: memref<5x16x16xf32, #tpu.memory_space<vmem>>, %arg3: memref<5x16x1xf32, #tpu.memory_space<vmem>>, %arg4: memref<8x128xf32, #tpu.memory_space<vmem>>) attributes {dimension_semantics = [#tpu.dimension_semantics<parallel>], iteration_bounds = array<i64: 1>, scalar_prefetch = 0 : i64, scratch_operands = 0 : i64, tpu.core_type = #tpu.core_type<tc>, window_params = [{transform_indices = @transform_0, window_bounds = array<i64: 128, 10>}, {pipeline_mode = #tpu.pipeline_mode<synchronous>, transform_indices = @transform_1, window_bounds = array<i64: 5, 16, 16>}, {pipeline_mode = #tpu.pipeline_mode<synchronous>, transform_indices = @transform_2, window_bounds = array<i64: 5, 16, 1>}, {transform_indices = @transform_3, window_bounds = array<i64: 8, 128>}]} {
    %c0 = arith.constant 0 : index
    %c0_0 = arith.constant 0 : index
    %0 = vector.load %arg1[%c0, %c0_0] : memref<128x10xf32, #tpu.memory_space<vmem>>, vector<128x10xf32>
    %c0_1 = arith.constant 0 : index
    %c0_2 = arith.constant 0 : index
    %c0_3 = arith.constant 0 : index
    %1 = vector.load %arg2[%c0_1, %c0_2, %c0_3] : memref<5x16x16xf32, #tpu.memory_space<vmem>>, vector<1x16x16xf32>
    %2 = vector.shape_cast %1 : vector<1x16x16xf32> to vector<16x16xf32>
    %3 = vector.extract_strided_slice %2 {offsets = [0, 0], sizes = [16, 10], strides = [1, 1]} : vector<16x16xf32> to vector<16x10xf32>
    %cst = arith.constant dense<0.000000e+00> : vector<16x128xf32>
    %4 = tpu.matmul %3, %0, %cst {dimension_numbers = #tpu.dot_dimension_numbers<[1], [1], [0], [0], [0, 0, 1, 0], [], []>} : vector<16x10xf32>, vector<128x10xf32>, vector<16x128xf32> -> vector<16x128xf32>
    %c0_4 = arith.constant 0 : index
    %c0_5 = arith.constant 0 : index
    %c0_6 = arith.constant 0 : index
    %5 = vector.load %arg3[%c0_4, %c0_5, %c0_6] : memref<5x16x1xf32, #tpu.memory_space<vmem>>, vector<1x16x1xf32>
    %6 = vector.shape_cast %5 : vector<1x16x1xf32> to vector<16x1xf32>
    %7 = vector.broadcast %6 : vector<16x1xf32> to vector<16x128xf32>
    %8 = arith.addf %4, %7 : vector<16x128xf32>
    %cst_7 = arith.constant 5.000000e-01 : f32
    %9 = vector.broadcast %cst_7 : f32 to vector<16x128xf32>
    %10 = arith.mulf %9, %8 : vector<16x128xf32>
    %11 = math.tanh %10 : vector<16x128xf32>
    %cst_8 = arith.constant 5.000000e-01 : f32
    %12 = vector.broadcast %cst_8 : f32 to vector<16x128xf32>
    %13 = arith.mulf %12, %11 : vector<16x128xf32>
    %cst_9 = arith.constant 5.000000e-01 : f32
    %14 = vector.broadcast %cst_9 : f32 to vector<16x128xf32>
    %15 = arith.addf %13, %14 : vector<16x128xf32>
    %c1 = arith.constant 1 : index
    %c0_10 = arith.constant 0 : index
    %c0_11 = arith.constant 0 : index
    %16 = vector.load %arg2[%c1, %c0_10, %c0_11] : memref<5x16x16xf32, #tpu.memory_space<vmem>>, vector<1x16x16xf32>
    %17 = vector.shape_cast %16 : vector<1x16x16xf32> to vector<16x16xf32>
    %cst_12 = arith.constant dense<0.000000e+00> : vector<16x128xf32>
    %18 = tpu.matmul %17, %15, %cst_12 {dimension_numbers = #tpu.dot_dimension_numbers<[1], [0], [0], [1], [0, 0, 1, 1], [], []>} : vector<16x16xf32>, vector<16x128xf32>, vector<16x128xf32> -> vector<16x128xf32>
    %c1_13 = arith.constant 1 : index
    %c0_14 = arith.constant 0 : index
    %c0_15 = arith.constant 0 : index
    %19 = vector.load %arg3[%c1_13, %c0_14, %c0_15] : memref<5x16x1xf32, #tpu.memory_space<vmem>>, vector<1x16x1xf32>
    %20 = vector.shape_cast %19 : vector<1x16x1xf32> to vector<16x1xf32>
    %21 = vector.broadcast %20 : vector<16x1xf32> to vector<16x128xf32>
    %22 = arith.addf %18, %21 : vector<16x128xf32>
    %cst_16 = arith.constant 5.000000e-01 : f32
    %23 = vector.broadcast %cst_16 : f32 to vector<16x128xf32>
    %24 = arith.mulf %23, %22 : vector<16x128xf32>
    %25 = math.tanh %24 : vector<16x128xf32>
    %cst_17 = arith.constant 5.000000e-01 : f32
    %26 = vector.broadcast %cst_17 : f32 to vector<16x128xf32>
    %27 = arith.mulf %26, %25 : vector<16x128xf32>
    %cst_18 = arith.constant 5.000000e-01 : f32
    %28 = vector.broadcast %cst_18 : f32 to vector<16x128xf32>
    %29 = arith.addf %27, %28 : vector<16x128xf32>
    %c2 = arith.constant 2 : index
    %c0_19 = arith.constant 0 : index
    %c0_20 = arith.constant 0 : index
    %30 = vector.load %arg2[%c2, %c0_19, %c0_20] : memref<5x16x16xf32, #tpu.memory_space<vmem>>, vector<1x16x16xf32>
    %31 = vector.shape_cast %30 : vector<1x16x16xf32> to vector<16x16xf32>
    %cst_21 = arith.constant dense<0.000000e+00> : vector<16x128xf32>
    %32 = tpu.matmul %31, %29, %cst_21 {dimension_numbers = #tpu.dot_dimension_numbers<[1], [0], [0], [1], [0, 0, 1, 1], [], []>} : vector<16x16xf32>, vector<16x128xf32>, vector<16x128xf32> -> vector<16x128xf32>
    %c2_22 = arith.constant 2 : index
    %c0_23 = arith.constant 0 : index
    %c0_24 = arith.constant 0 : index
    %33 = vector.load %arg3[%c2_22, %c0_23, %c0_24] : memref<5x16x1xf32, #tpu.memory_space<vmem>>, vector<1x16x1xf32>
    %34 = vector.shape_cast %33 : vector<1x16x1xf32> to vector<16x1xf32>
    %35 = vector.broadcast %34 : vector<16x1xf32> to vector<16x128xf32>
    %36 = arith.addf %32, %35 : vector<16x128xf32>
    %cst_25 = arith.constant 5.000000e-01 : f32
    %37 = vector.broadcast %cst_25 : f32 to vector<16x128xf32>
    %38 = arith.mulf %37, %36 : vector<16x128xf32>
    %39 = math.tanh %38 : vector<16x128xf32>
    %cst_26 = arith.constant 5.000000e-01 : f32
    %40 = vector.broadcast %cst_26 : f32 to vector<16x128xf32>
    %41 = arith.mulf %40, %39 : vector<16x128xf32>
    %cst_27 = arith.constant 5.000000e-01 : f32
    %42 = vector.broadcast %cst_27 : f32 to vector<16x128xf32>
    %43 = arith.addf %41, %42 : vector<16x128xf32>
    %c3 = arith.constant 3 : index
    %c0_28 = arith.constant 0 : index
    %c0_29 = arith.constant 0 : index
    %44 = vector.load %arg2[%c3, %c0_28, %c0_29] : memref<5x16x16xf32, #tpu.memory_space<vmem>>, vector<1x16x16xf32>
    %45 = vector.shape_cast %44 : vector<1x16x16xf32> to vector<16x16xf32>
    %cst_30 = arith.constant dense<0.000000e+00> : vector<16x128xf32>
    %46 = tpu.matmul %45, %43, %cst_30 {dimension_numbers = #tpu.dot_dimension_numbers<[1], [0], [0], [1], [0, 0, 1, 1], [], []>} : vector<16x16xf32>, vector<16x128xf32>, vector<16x128xf32> -> vector<16x128xf32>
    %c3_31 = arith.constant 3 : index
    %c0_32 = arith.constant 0 : index
    %c0_33 = arith.constant 0 : index
    %47 = vector.load %arg3[%c3_31, %c0_32, %c0_33] : memref<5x16x1xf32, #tpu.memory_space<vmem>>, vector<1x16x1xf32>
    %48 = vector.shape_cast %47 : vector<1x16x1xf32> to vector<16x1xf32>
    %49 = vector.broadcast %48 : vector<16x1xf32> to vector<16x128xf32>
    %50 = arith.addf %46, %49 : vector<16x128xf32>
    %cst_34 = arith.constant 5.000000e-01 : f32
    %51 = vector.broadcast %cst_34 : f32 to vector<16x128xf32>
    %52 = arith.mulf %51, %50 : vector<16x128xf32>
    %53 = math.tanh %52 : vector<16x128xf32>
    %cst_35 = arith.constant 5.000000e-01 : f32
    %54 = vector.broadcast %cst_35 : f32 to vector<16x128xf32>
    %55 = arith.mulf %54, %53 : vector<16x128xf32>
    %cst_36 = arith.constant 5.000000e-01 : f32
    %56 = vector.broadcast %cst_36 : f32 to vector<16x128xf32>
    %57 = arith.addf %55, %56 : vector<16x128xf32>
    %c4 = arith.constant 4 : index
    %c0_37 = arith.constant 0 : index
    %c0_38 = arith.constant 0 : index
    %58 = vector.load %arg2[%c4, %c0_37, %c0_38] : memref<5x16x16xf32, #tpu.memory_space<vmem>>, vector<1x16x16xf32>
    %59 = vector.shape_cast %58 : vector<1x16x16xf32> to vector<16x16xf32>
    %cst_39 = arith.constant dense<0.000000e+00> : vector<16x128xf32>
    %60 = tpu.matmul %59, %57, %cst_39 {dimension_numbers = #tpu.dot_dimension_numbers<[1], [0], [0], [1], [0, 0, 1, 1], [], []>} : vector<16x16xf32>, vector<16x128xf32>, vector<16x128xf32> -> vector<16x128xf32>
    %c4_40 = arith.constant 4 : index
    %c0_41 = arith.constant 0 : index
    %c0_42 = arith.constant 0 : index
    %61 = vector.load %arg3[%c4_40, %c0_41, %c0_42] : memref<5x16x1xf32, #tpu.memory_space<vmem>>, vector<1x16x1xf32>
    %62 = vector.shape_cast %61 : vector<1x16x1xf32> to vector<16x1xf32>
    %63 = vector.broadcast %62 : vector<16x1xf32> to vector<16x128xf32>
    %64 = arith.addf %60, %63 : vector<16x128xf32>
    %65 = vector.extract_strided_slice %64 {offsets = [0, 0], sizes = [8, 128], strides = [1, 1]} : vector<16x128xf32> to vector<8x128xf32>
    %66 = tpu.iota {dimensions = array<i32: 0>} : vector<8x128xi32>
    %c3_i32 = arith.constant 3 : i32
    %67 = vector.broadcast %c3_i32 : i32 to vector<8x128xi32>
    %68 = arith.cmpi slt, %66, %67 : vector<8x128xi32>
    %cst_43 = arith.constant -1.000000e+30 : f32
    %69 = vector.broadcast %cst_43 : f32 to vector<8x128xf32>
    %70 = arith.select %68, %65, %69 : vector<8x128xi1>, vector<8x128xf32>
    %cst_44 = arith.constant dense<0xFF800000> : vector<128xf32>
    %71 = vector.multi_reduction <maximumf>, %70, %cst_44 [0] : vector<8x128xf32> to vector<128xf32>
    %72 = vector.shape_cast %71 : vector<128xf32> to vector<1x128xf32>
    %73 = vector.broadcast %72 : vector<1x128xf32> to vector<8x128xf32>
    %74 = arith.subf %70, %73 : vector<8x128xf32>
    %75 = math.exp %74 : vector<8x128xf32>
    %cst_45 = arith.constant dense<0.000000e+00> : vector<128xf32>
    %76 = vector.multi_reduction <add>, %75, %cst_45 [0] : vector<8x128xf32> to vector<128xf32>
    %77 = vector.shape_cast %76 : vector<128xf32> to vector<1x128xf32>
    %78 = math.log %77 : vector<1x128xf32>
    %79 = arith.addf %72, %78 : vector<1x128xf32>
    %80 = vector.broadcast %79 : vector<1x128xf32> to vector<8x128xf32>
    %81 = arith.subf %65, %80 : vector<8x128xf32>
    %c0_46 = arith.constant 0 : index
    %c0_47 = arith.constant 0 : index
    %82 = vector.load %arg4[%c0_46, %c0_47] : memref<8x128xf32, #tpu.memory_space<vmem>>, vector<8x128xf32>
    tpu.vector_store %arg4[%c0_46, %c0_47], %81 {strides = array<i32>} : memref<8x128xf32, #tpu.memory_space<vmem>>, vector<8x128xf32>,
    return
  }
  func.func @transform_0(%arg0: i32) -> (i32, i32) {
    %c0_i32 = arith.constant 0 : i32
    %c0_i32_0 = arith.constant 0 : i32
    return %arg0, %c0_i32 : i32, i32
  }
  func.func @transform_1(%arg0: i32) -> (i32, i32, i32) {
    %c0_i32 = arith.constant 0 : i32
    %c0_i32_0 = arith.constant 0 : i32
    %c0_i32_1 = arith.constant 0 : i32
    %c0_i32_2 = arith.constant 0 : i32
    return %c0_i32, %c0_i32_0, %c0_i32_1 : i32, i32, i32
  }
  func.func @transform_2(%arg0: i32) -> (i32, i32, i32) {
    %c0_i32 = arith.constant 0 : i32
    %c0_i32_0 = arith.constant 0 : i32
    %c0_i32_1 = arith.constant 0 : i32
    %c0_i32_2 = arith.constant 0 : i32
    return %c0_i32, %c0_i32_0, %c0_i32_1 : i32, i32, i32
  }
  func.func @transform_3(%arg0: i32) -> (i32, i32) {
    %c0_i32 = arith.constant 0 : i32
    %c0_i32_0 = arith.constant 0 : i32
    return %c0_i32, %arg0 : i32, i32
  }
}

</mosaic_0001>

<bundles_post_ra>
// kernel: tpu_custom_call.1
= control target key start
LH: loop header
LB: loop body
LE: loop exit
PB: predicated region body
PF: predicated region fallthrough
CT: control target
= control target key end

     0   :  { %vm45_vm0 = vcmask 80896   ;;  %v817_v2 = vmov 0   ;;  %s989_s0 = inlined_call_operand.vmem [shape: f32[128,10], index: 0, kind: input, shape index: {}]   ;;  %s990_s1 = inlined_call_operand.vmem [shape: f32[5,16,16], index: 1, kind: input, shape index: {}]   ;;  %s991_s2 = inlined_call_operand.vmem [shape: f32[5,16,1], index: 2, kind: input, shape index: {}]   ;;  %s992_s3 = inlined_call_operand.hbm [shape: f32[8,128], index: 3, kind: output, shape index: {}]  }
   0x1   :  { %v30_v0 = vld [vmem:[%s989_s0 + $0x78] sm:$0xff]  ;;  %v29_v1 = vld [vmem:[%s989_s0 + $0x70] sm:$0xff]  ;;  %773 = vset.pattern.permute.xlu0 %v817_v2  ;;  %774 = vset.pattern.permute.xlu1 %v817_v2  ;;  %v28_v3 = vld [vmem:[%s989_s0 + $0x68] sm:$0xff] }
   0x2   :  { %708 = vmatprep.subr.msk.mxu0 %vm45_vm0, %v30_v0  ;;  %v31_v4 = vld [vmem:[%s990_s1] sm:$0xff]  ;;  %v34_v5 = vld [vmem:[%s991_s2 + $0x8] sm:$0xff] }
   0x3   :  { %709 = vmatpush3.xpose.msk.msra.mxu0 %vm45_vm0, %v30_v0  ;;  %740 = vmatprep.mubr.msk.f32.mxu0 %vm45_vm0, %v31_v4 }
   0x4   :  { %710 = vmatprep.subr.msk.mxu0 %vm45_vm0, %v29_v1  ;;  %42 = vperm.xlu0 %773, %v34_v5  }
   0x7   :  { %711 = vmatpush3.xpose.msk.msra.mxu0 %vm45_vm0, %v29_v1 }
   0x8   :  { %712 = vmatprep.subr.msk.mxu0 %vm45_vm0, %v28_v3 }
   0x9   :  { %8 = vsyncpa [#allocation3], 0  ;;  %v27_v6 = vld [vmem:[%s989_s0 + $0x60] sm:$0xff]  ;;  %v26_v8 = vld [vmem:[%s989_s0 + $0x58] sm:$0xff]  ;;  %vm199_vm1 = vcmask 130048  }
   0xa   :  { %v33_v7 = vld [vmem:[%s991_s2] sm:$0xff]  ;;  %v659_v9 = vld [vmem:[%s991_s2 + $0x28] sm:$0xff]  ;;  %v25_v10 = vld [vmem:[%s989_s0 + $0x50] sm:$0xff] }
   0xb   :  { %713 = vmatpush3.xpose.msk.msra.mxu0 %vm45_vm0, %v28_v3  ;;  %37 = vperm.xlu0 %773, %v33_v7   ;;  %v665_v11 = vld [vmem:[%s991_s2 + $0x38] sm:$0xff]  ;;  %v24_v12 = vld [vmem:[%s989_s0 + $0x48] sm:$0xff]  ;;  %v670_v13 = vld [vmem:[%s991_s2 + $0x40] sm:$0xff] }
   0xc   :  { %714 = vmatprep.subr.msk.mxu0 %vm45_vm0, %v27_v6  ;;  %v23_v14 = vld [vmem:[%s989_s0 + $0x40] sm:$0xff]  ;;  %v22_v15 = vld [vmem:[%s989_s0 + $0x38] sm:$0xff]  ;;  %v21_v16 = vld [vmem:[%s989_s0 + $0x30] sm:$0xff] }
   0xd   :  { %v20_v17 = vld [vmem:[%s989_s0 + $0x28] sm:$0xff]  ;;  %v19_v18 = vld [vmem:[%s989_s0 + $0x20] sm:$0xff]  ;;  %v18_v19 = vld [vmem:[%s989_s0 + $0x18] sm:$0xff] }
   0xe   :  { %v17_v20 = vld [vmem:[%s989_s0 + $0x10] sm:$0xff]  ;;  %v16_v21 = vld [vmem:[%s989_s0 + $0x8] sm:$0xff]  ;;  %v15_v22 = vld [vmem:[%s989_s0] sm:$0xff] }
   0xf   :  { %715 = vmatpush3.xpose.msk.msra.mxu0 %vm45_vm0, %v27_v6  ;;  %302 = vperm.xlu0 %773, %v659_v9   ;;  %v32_v23 = vld [vmem:[%s990_s1 + $0x8] sm:$0xff]  ;;  %v650_v24 = vld [vmem:[%s990_s1 + $0x10] sm:$0xff]  ;;  %v653_v25 = vld [vmem:[%s991_s2 + $0x18] sm:$0xff] }
  0x10   :  { %716 = vmatprep.subr.msk.mxu0 %vm45_vm0, %v26_v8  ;;  %747 = vmatprep.mubr.msk.f32.mxu1 %vm199_vm1, %v650_v24  ;;  %v652_v26 = vld [vmem:[%s991_s2 + $0x10] sm:$0xff]  ;;  %v658_v27 = vld [vmem:[%s991_s2 + $0x20] sm:$0xff]  ;;  %v651_v43 = vld [vmem:[%s990_s1 + $0x18] sm:$0xff] }
  0x11   :  { %196 = vperm.xlu1 %774, %v653_v25   ;;  %v664_v28 = vld [vmem:[%s991_s2 + $0x30] sm:$0xff]  ;;  %v656_v44 = vld [vmem:[%s990_s1 + $0x20] sm:$0xff]  ;;  %v657_v59 = vld [vmem:[%s990_s1 + $0x28] sm:$0xff] }
  0x12   :  { %v662_v60 = vld [vmem:[%s990_s1 + $0x30] sm:$0xff] }
  0x13   :  { %717 = vmatpush3.xpose.msk.msra.mxu0 %vm45_vm0, %v26_v8  ;;  %407 = vperm.xlu0 %773, %v665_v11   ;;  %v663_v11 = vld [vmem:[%s990_s1 + $0x38] sm:$0xff] }
  0x14   :  { %718 = vmatprep.subr.msk.mxu0 %vm45_vm0, %v25_v10 }
  0x15   :  { %191 = vperm.xlu1 %774, %v652_v26  }
  0x17   :  { %719 = vmatpush3.xpose.msk.msra.mxu0 %vm45_vm0, %v25_v10  ;;  %507 = vperm.xlu0 %773, %v670_v13  }
  0x18   :  { %720 = vmatprep.subr.msk.mxu0 %vm45_vm0, %v24_v12 }
  0x19   :  { %297 = vperm.xlu1 %774, %v658_v27   ;;  %v669_v27 = vld [vmem:[%s990_s1 + $0x48] sm:$0xff] }
  0x1b   :  { %721 = vmatpush3.xpose.msk.msra.mxu0 %vm45_vm0, %v24_v12  ;;  %v668_v12 = vld [vmem:[%s990_s1 + $0x40] sm:$0xff]  ;;  %s818_s1 = smov [#allocation2]  }
  0x1c   :  { %722 = vmatprep.subr.msk.mxu0 %vm45_vm0, %v23_v14  ;;  %s624_s26 = sshll.u32 %s818_s1, 4  ;;  %s625_s26 = int_to_ptr.vmem [resolvable:$true] %s624_s26 }
  0x1d   :  { %402 = vperm.xlu1 %774, %v664_v28   ;;  %v594_v28 = vlaneseq  ;;  %s795_s27 = scalar_lea.vmem %s625_s26, 128  ;;  %p800_p1 = scmp.lt.s32.totalorder %s625_s26, %s625_s26 }
  0x1e   :  { %p796_p0 = scmp.ne.s32.totalorder %s625_s26, %s795_s27  ;;  %p801_p2 = scmp.lt.s32.totalorder %s795_s27, %s795_s27 }
  0x1f   :  { %723 = vmatpush3.xpose.msk.msra.mxu0 %vm45_vm0, %v23_v14 }
  0x20   :  { %724 = vmatprep.subr.msk.mxu0 %vm45_vm0, %v22_v15  ;;  %p802_p3 = por %p801_p2, %p800_p1 }
  0x22   :  { %p803_p4 = pnand %p802_p3, %p796_p0 }
  0x23   :  { %725 = vmatpush3.xpose.msk.msra.mxu0 %vm45_vm0, %v22_v15 }
  0x24   :  { %726 = vmatprep.subr.msk.mxu0 %vm45_vm0, %v21_v16 }
  0x27   :  { %727 = vmatpush3.xpose.msk.msra.mxu0 %vm45_vm0, %v21_v16 }
  0x28   :  { %728 = vmatprep.subr.msk.mxu0 %vm45_vm0, %v20_v17 }
  0x2b   :  { %729 = vmatpush3.xpose.msk.msra.mxu0 %vm45_vm0, %v20_v17 }
  0x2c   :  { %730 = vmatprep.subr.msk.mxu0 %vm45_vm0, %v19_v18 }
  0x2f   :  { %731 = vmatpush3.xpose.msk.msra.mxu0 %vm45_vm0, %v19_v18 }
  0x30   :  { %732 = vmatprep.subr.msk.mxu0 %vm45_vm0, %v18_v19 }
  0x33   :  { %733 = vmatpush3.xpose.msk.msra.mxu0 %vm45_vm0, %v18_v19 }
  0x34   :  { %734 = vmatprep.subr.msk.mxu0 %vm45_vm0, %v17_v20 }
  0x37   :  { %735 = vmatpush3.xpose.msk.msra.mxu0 %vm45_vm0, %v17_v20 }
  0x38   :  { %736 = vmatprep.subr.msk.mxu0 %vm45_vm0, %v16_v21 }
  0x3b   :  { %737 = vmatpush3.xpose.msk.msra.mxu0 %vm45_vm0, %v16_v21 }
  0x3c   :  { %738 = vmatprep.subr.msk.mxu0 %vm45_vm0, %v15_v22 }
  0x3f   :  { %739 = vmatpush3.xpose.msk.msra.mxu0 %vm45_vm0, %v15_v22 }
  0x42   :  { %741 = vmatmul.mubr.msk.f32.vlgmr.msra.gmra.mxu0 %vm45_vm0, %v32_v23 }
  0x7f   :  { %v43_v29 = vpop.permute.xlu0 %42 }
  0x86   :  { %v38_v32 = vpop.permute.xlu0 %37 }
  0x8a   :  { %v303_v61 = vpop.permute.xlu0 %302 }
  0x8c   :  { %v197_v45 = vpop.permute.xlu1 %196 }
  0x8e   :  { %v408_v13 = vpop.permute.xlu0 %407 }
  0x90   :  { %v192_v48 = vpop.permute.xlu1 %191 }
  0x94   :  { %v298_v0 = vpop.permute.xlu1 %297 }
  0x98   :  { %v403_v16 = vpop.permute.xlu1 %402 }
 0x102   :  { %v742_v30 = vpop.f32.mrf.mxu0 }
 0x103   :  { %v172_v31 = vadd.f32 %v742_v30, %v43_v29  ;;  %v595_v29 = vshrl.u32 %v594_v28, 7 }
 0x104   :  { %v166_v33 = vpop.f32.mrf.mxu0 }
 0x105   :  { %v176_v34 = vmul.f32 0.5, %v172_v31  ;;  %v167_v35 = vadd.f32 %v166_v33, %v38_v32  ;;  %v508_v31 = vpop.permute.xlu0 %507  ;;  %vm596_vm2 = vcmp.lt.s32.totalorder %v595_v29, 3 }
 0x107   :  { %775 = vtanh.f32 %v176_v34  ;;  %v175_v36 = vmul.f32 0.5, %v167_v35 }
 0x109   :  { %777 = vtanh.f32 %v175_v36 }
 0x114   :  { %v776_v37 = vpop.eup %775 }
 0x115   :  { %v180_v38 = vmul.f32 0.5, %v776_v37 }
 0x116   :  { %v778_v39 = vpop.eup %777 }
 0x117   :  { %v182_v40 = vadd.f32 0.5, %v180_v38  ;;  %v179_v41 = vmul.f32 0.5, %v778_v39 }
 0x119   :  { %743 = vmatprep.subr.mxu1 %v182_v40  ;;  %v181_v42 = vadd.f32 0.5, %v179_v41 }
 0x11a   :  { %744 = vmatpush3.msra.mxu1 %v182_v40 }
 0x11b   :  { %745 = vmatprep.subr.mxu1 %v181_v42 }
 0x11c   :  { %746 = vmatpush3.msra.mxu1 %v181_v42 }
 0x11d   :  { %748 = vmatmul.mubr.msk.f32.vlgmr.msra.gmra.mxu1 %vm199_vm1, %v651_v43 }
 0x11e   :  { %754 = vmatprep.mubr.msk.f32.mxu1 %vm199_vm1, %v656_v44 }
 0x1dd   :  { %v749_v46 = vpop.f32.mrf.mxu1 }
 0x1de   :  { %v278_v47 = vadd.f32 %v749_v46, %v197_v45 }
 0x1df   :  { %v272_v49 = vpop.f32.mrf.mxu1 }
 0x1e0   :  { %v282_v50 = vmul.f32 0.5, %v278_v47  ;;  %v273_v51 = vadd.f32 %v272_v49, %v192_v48 }
 0x1e2   :  { %779 = vtanh.f32 %v282_v50  ;;  %v281_v52 = vmul.f32 0.5, %v273_v51 }
 0x1e4   :  { %781 = vtanh.f32 %v281_v52 }
 0x1ef   :  { %v780_v53 = vpop.eup %779 }
 0x1f0   :  { %v286_v54 = vmul.f32 0.5, %v780_v53 }
 0x1f1   :  { %v782_v55 = vpop.eup %781 }
 0x1f2   :  { %v288_v56 = vadd.f32 0.5, %v286_v54  ;;  %v285_v57 = vmul.f32 0.5, %v782_v55 }
 0x1f4   :  { %750 = vmatprep.subr.mxu1 %v288_v56  ;;  %v287_v58 = vadd.f32 0.5, %v285_v57 }
 0x1f5   :  { %751 = vmatpush3.msra.mxu1 %v288_v56 }
 0x1f6   :  { %752 = vmatprep.subr.mxu1 %v287_v58 }
 0x1f7   :  { %753 = vmatpush3.msra.mxu1 %v287_v58 }
 0x1f8   :  { %755 = vmatmul.mubr.msk.f32.vlgmr.msra.gmra.mxu1 %vm199_vm1, %v657_v59 }
 0x1f9   :  { %761 = vmatprep.mubr.msk.f32.mxu1 %vm199_vm1, %v662_v60 }
 0x2b8   :  { %v756_v62 = vpop.f32.mrf.mxu1 }
 0x2b9   :  { %v383_v63 = vadd.f32 %v756_v62, %v303_v61 }
 0x2ba   :  { %v377_v1 = vpop.f32.mrf.mxu1 }
 0x2bb   :  { %v387_v2 = vmul.f32 0.5, %v383_v63  ;;  %v378_v3 = vadd.f32 %v377_v1, %v298_v0 }
 0x2bd   :  { %783 = vtanh.f32 %v387_v2  ;;  %v386_v4 = vmul.f32 0.5, %v378_v3 }
 0x2bf   :  { %785 = vtanh.f32 %v386_v4 }
 0x2ca   :  { %v784_v5 = vpop.eup %783 }
 0x2cb   :  { %v391_v6 = vmul.f32 0.5, %v784_v5 }
 0x2cc   :  { %v786_v7 = vpop.eup %785 }
 0x2cd   :  { %v393_v8 = vadd.f32 0.5, %v391_v6  ;;  %v390_v9 = vmul.f32 0.5, %v786_v7 }
 0x2cf   :  { %757 = vmatprep.subr.mxu1 %v393_v8  ;;  %v392_v10 = vadd.f32 0.5, %v390_v9 }
 0x2d0   :  { %758 = vmatpush3.msra.mxu1 %v393_v8 }
 0x2d1   :  { %759 = vmatprep.subr.mxu1 %v392_v10 }
 0x2d2   :  { %760 = vmatpush3.msra.mxu1 %v392_v10 }
 0x2d3   :  { %762 = vmatmul.mubr.msk.f32.vlgmr.msra.gmra.mxu1 %vm199_vm1, %v663_v11 }
 0x2d4   :  { %768 = vmatprep.mubr.msk.f32.mxu1 %vm199_vm1, %v668_v12 }
 0x393   :  { %v763_v14 = vpop.f32.mrf.mxu1 }
 0x394   :  { %v488_v15 = vadd.f32 %v763_v14, %v408_v13 }
 0x395   :  { %v482_v17 = vpop.f32.mrf.mxu1 }
 0x396   :  { %v492_v18 = vmul.f32 0.5, %v488_v15  ;;  %v483_v19 = vadd.f32 %v482_v17, %v403_v16 }
 0x398   :  { %787 = vtanh.f32 %v492_v18  ;;  %v491_v20 = vmul.f32 0.5, %v483_v19 }
 0x39a   :  { %789 = vtanh.f32 %v491_v20 }
 0x3a5   :  { %v788_v21 = vpop.eup %787 }
 0x3a6   :  { %v496_v22 = vmul.f32 0.5, %v788_v21 }
 0x3a7   :  { %v790_v23 = vpop.eup %789 }
 0x3a8   :  { %v498_v24 = vadd.f32 0.5, %v496_v22  ;;  %v495_v25 = vmul.f32 0.5, %v790_v23 }
 0x3aa   :  { %764 = vmatprep.subr.mxu1 %v498_v24  ;;  %v497_v26 = vadd.f32 0.5, %v495_v25 }
 0x3ab   :  { %765 = vmatpush3.msra.mxu1 %v498_v24 }
 0x3ac   :  { %766 = vmatprep.subr.mxu1 %v497_v26 }
 0x3ad   :  { %767 = vmatpush3.msra.mxu1 %v497_v26 }
 0x3ae   :  { %769 = vmatmul.mubr.msk.f32.vlgmr.msra.gmra.mxu1 %vm199_vm1, %v669_v27 }
 0x46e   :  { %v770_v30 = vpop.f32.mrf.mxu1 }
 0x470   :  { %v586_v32 = vpop.f32.mrf.mxu1 }
 0x471   :  { %v587_v33 = vadd.f32 %v586_v32, %v508_v31 }
 0x473   :  { %v597_v34 = vsel %vm596_vm2, %v587_v33, -1e+30 }
 0x474   :  { %v598_v35 = vrot.slane %v597_v34, 4 }
 0x476   :  { %v599_v36 = vmax.f32 %v597_v34, %v598_v35 }
 0x478   :  { %v600_v37 = vrot.slane %v599_v36, 2 }
 0x47a   :  { %v601_v38 = vmax.f32 %v599_v36, %v600_v37 }
 0x47c   :  { %v602_v39 = vrot.slane %v601_v38, 1 }
 0x47e   :  { %v603_v40 = vmax.f32 %v601_v38, %v602_v39 }
 0x480   :  { %v604_v41 = vsub.f32 %v597_v34, %v603_v40 }
 0x482   :  { %v605_v42 = vmul.f32 1.442695, %v604_v41 }
 0x484   :  { %791 = vpow2.f32 %v605_v42 }
 0x491   :  { %v792_v43 = vpop.eup %791 }
 0x492   :  { %v607_v44 = vrot.slane %v792_v43, 4 }
 0x494   :  { %v608_v45 = vadd.f32 %v792_v43, %v607_v44 }
 0x496   :  { %v609_v46 = vrot.slane %v608_v45, 2 }
 0x498   :  { %v610_v47 = vadd.f32 %v609_v46, %v608_v45 }
 0x49a   :  { %v611_v48 = vrot.slane %v610_v47, 1 }
 0x49c   :  { %v612_v49 = vadd.f32 %v611_v48, %v610_v47 }
 0x49e   :  { %793 = vlog2.f32 %v612_v49 }
 0x4ab   :  { %v794_v50 = vpop.eup %793 }
 0x4ac   :  { %v614_v51 = vmul.f32 0.6931472, %v794_v50 }
 0x4ae   :  { %v615_v52 = vadd.f32 %v614_v51, %v603_v40 }
 0x4b0   :  { %v616_v53 = vsub.f32 %v587_v33, %v615_v52 }
 0x4b2   :  { %617 = vst [vmem:[#allocation2] sm:$0xff] %v616_v53 }
 0x4b3   :  { %806 = shalt.err (!%p803_p4)
}
 0x4b4   :  { %627 = dma.vmem_to_hbm [thread:$0]  %s625_s26, 128, %s992_s3, [#allocation3]  }
 0x4b5   :  { %815 = dma.done.wait [#allocation3], 128  }
 0x4b6   :  { %816 = vsyncadd [#allocation3], 4294967168 }
 0x4b7   :  { %631 = vsyncpa [#allocation3], 1 }

</bundles_post_ra>
